<compile_context>
chip_gen: v7x
topology: tpu7x:2x2x1
jax: 0.10.0
libtpu: 0.0.40
codegen_flags: <defaults>
</compile_context>

<pallas_src>
import functools

import jax
import jax.numpy as jnp
from jax import lax
from jax.experimental import pallas as pl
from jax.experimental.pallas import tpu as pltpu


# ---------------------------------------------------------------------------
# Kernels
# ---------------------------------------------------------------------------

def _fused_bn_kernel(x_ref, gain_ref, bias_ref, smean_ref, svar_ref,
                     out_ref, new_mean_ref, new_var_ref,
                     *, inv_m, eps, momentum):
    """Small-activation fast path: stats + normalize in one kernel.

    x is fully VMEM-resident, so the whole layer costs 1 HBM read + 1 write.
    """
    x_dtype = x_ref.dtype
    xf = x_ref[...].astype(jnp.float32)                            # (N, C, HW)
    s = jnp.sum(jnp.sum(xf, axis=2, keepdims=True), axis=0)        # (C, 1)
    q = jnp.sum(jnp.sum(xf * xf, axis=2, keepdims=True), axis=0)   # (C, 1)
    m_f32 = s * inv_m
    var_f32 = q * inv_m - m_f32 * m_f32
    # manual_bn casts mean/var back to x dtype before fused_bn
    m = m_f32.astype(x_dtype)
    var = var_f32.astype(x_dtype)
    scale = jax.lax.rsqrt(var + eps) * gain_ref[...]               # (C, 1)
    shift = m * scale - bias_ref[...]                              # (C, 1)
    out_ref[...] = (x_ref[...] * scale[None] - shift[None]).astype(out_ref.dtype)
    new_mean_ref[...] = (smean_ref[...] * (1.0 - momentum)
                         + m.astype(jnp.float32) * momentum)
    new_var_ref[...] = (svar_ref[...] * (1.0 - momentum)
                        + var.astype(jnp.float32) * momentum)


def _partial_sums_kernel(x_ref, sum_ref, sumsq_ref, *, nchunks):
    """Streaming phase 1: lane-dense per-channel partial sum / sum-of-squares.

    Accumulates directly into the (1, C, 128) output block of the current
    megacore partition p = program_id(0); accumulation is VPU-only adds of
    128-lane column slices. Cross-lane/partition reduce and the
    mean/var/scale/shift/momentum finalize happen in a tiny XLA epilogue.
    """
    n = pl.program_id(1)
    s = pl.program_id(2)

    @pl.when(jnp.logical_and(n == 0, s == 0))
    def _init():
        sum_ref[...] = jnp.zeros_like(sum_ref)
        sumsq_ref[...] = jnp.zeros_like(sumsq_ref)

    if nchunks is None:
        # Spatial tile not a multiple of 128 lanes: plain cross-lane reduce.
        x = x_ref[0].astype(jnp.float32)                       # (C, thw)
        sum_ref[0, :, 0:1] += jnp.sum(x, axis=-1, keepdims=True)
        sumsq_ref[0, :, 0:1] += jnp.sum(x * x, axis=-1, keepdims=True)
    elif nchunks <= 16:
        for k in range(nchunks):                               # static unroll
            xc = x_ref[0, :, k * 128:(k + 1) * 128].astype(jnp.float32)
            sum_ref[0] += xc
            sumsq_ref[0] += xc * xc
    else:
        def body(k, carry):
            off = pl.multiple_of(k * 128, 128)
            xc = x_ref[0, :, pl.ds(off, 128)].astype(jnp.float32)
            sum_ref[0] += xc
            sumsq_ref[0] += xc * xc
            return carry
        lax.fori_loop(0, nchunks, body, 0, unroll=8)


def _apply_kernel(x_ref, scale_ref, shift_ref, out_ref):
    """Streaming phase 2: out = x * scale - shift, lane-dense spatial tiles."""
    scale = scale_ref[...][None]   # (1, C, 1)
    shift = shift_ref[...][None]   # (1, C, 1)
    out_ref[...] = (x_ref[...] * scale - shift).astype(out_ref.dtype)


# ---------------------------------------------------------------------------
# Wrapper
# ---------------------------------------------------------------------------

def _choose_spatial_tile(hw, c, itemsize, target_bytes):
    """Largest multiple-of-128 divisor of hw with c*thw*itemsize <= target."""
    if hw % 128 != 0:
        # TODO(synk): tile over channels (with per-block partial sums) when
        # C*HW is too large for a full-spatial block on 64 MiB-VMEM parts.
        return hw
    max_rows = max(128, (target_bytes // max(1, c * itemsize)) // 128 * 128)
    thw = min(hw, max_rows)
    while hw % thw != 0:
        thw -= 128
    return thw


def my_bn_forward(x, gain, bias, stored_mean, stored_var,
                  eps=1e-5, momentum=0.1,
                  force_streaming=False, spatial_tile_bytes=None):
    """Training-mode forward of myBN.

    x:    (N, C, H, W)  NCHW (same as the PyTorch module)
    gain: (1, C, 1, 1)
    bias: (1, C, 1, 1)
    Returns: out (N, C, H, W), new_stored_mean (C,), new_stored_var (C,)
    """
    N, C, H, W = x.shape
    HW = H * W
    M = N * HW
    inv_m = 1.0 / M

    # Free layout change: NCHW is contiguous as (N, C, H*W); no transpose.
    x3 = x.reshape(N, C, HW)
    g2 = gain.reshape(C, 1)
    b2 = bias.reshape(C, 1)
    sm = stored_mean.reshape(C, 1).astype(jnp.float32)
    sv = stored_var.reshape(C, 1).astype(jnp.float32)

    # dtype of scale/shift/out follows PyTorch type promotion of x,gain,bias
    stat_dtype = jnp.promote_types(x.dtype,
                                   jnp.promote_types(gain.dtype, bias.dtype))
    it_x = jnp.dtype(x.dtype).itemsize
    it_out = jnp.dtype(stat_dtype).itemsize

    # ------------------ fused small-activation fast path -------------------
    xf32_bytes = N * C * HW * 4
    if (not force_streaming) and xf32_bytes <= (4 << 20):
        x_bytes = N * C * HW * it_x
        out_bytes = N * C * HW * it_out
        vmem_f = int(min(40 << 20,
                         2 * (x_bytes + out_bytes) + 3 * xf32_bytes + (8 << 20)))
        kernel = functools.partial(_fused_bn_kernel, inv_m=inv_m, eps=eps,
                                   momentum=momentum)
        out3, new_mean, new_var = pl.pallas_call(
            kernel,
            grid=(1,),
            in_specs=[
                pl.BlockSpec((N, C, HW), lambda i: (0, 0, 0)),
                pl.BlockSpec((C, 1), lambda i: (0, 0)),
                pl.BlockSpec((C, 1), lambda i: (0, 0)),
                pl.BlockSpec((C, 1), lambda i: (0, 0)),
                pl.BlockSpec((C, 1), lambda i: (0, 0)),
            ],
            out_specs=[
                pl.BlockSpec((N, C, HW), lambda i: (0, 0, 0)),
                pl.BlockSpec((C, 1), lambda i: (0, 0)),
                pl.BlockSpec((C, 1), lambda i: (0, 0)),
            ],
            out_shape=(
                jax.ShapeDtypeStruct((N, C, HW), stat_dtype),   # out
                jax.ShapeDtypeStruct((C, 1), jnp.float32),      # new stored_mean
                jax.ShapeDtypeStruct((C, 1), jnp.float32),      # new stored_var
            ),
            compiler_params=pltpu.CompilerParams(
                dimension_semantics=("arbitrary",),
                vmem_limit_bytes=vmem_f),
        )(x3, g2, b2, sm, sv)
        return (out3.reshape(N, C, H, W),
                new_mean.reshape(C), new_var.reshape(C))

    # ------------------ streaming two-phase path ----------------------------
    # Phase 1 (reduction, no big output tile): ~6 MiB x tiles.
    p1_target = spatial_tile_bytes or (6 << 20)
    # Phase 2 (normalize): x-in + out tile ~9 MiB combined, double-buffered.
    p2_target = spatial_tile_bytes or max(
        128 * C * it_x, int((9 << 20) * it_x / (it_x + it_out)))

    thw1 = _choose_spatial_tile(HW, C, it_x, p1_target)
    thw2 = _choose_spatial_tile(HW, C, it_x, p2_target)
    n_s1 = HW // thw1
    n_s2 = HW // thw2
    nchunks = thw1 // 128 if thw1 % 128 == 0 else None

    # Megacore split for the reduction: a leading "parallel" axis P in {1,2}
    # with per-partition partial sums (finalized in XLA below). Split over
    # batch when N is even, otherwise over spatial tiles when possible.
    if N % 2 == 0:
        P, n_n, n_sp = 2, N // 2, n_s1
        x_map1 = lambda p, n, s: (p * (N // 2) + n, 0, s)
    elif n_s1 % 2 == 0:
        P, n_n, n_sp = 2, N, n_s1 // 2
        x_map1 = lambda p, n, s: (n, 0, p * (n_s1 // 2) + s)
    else:
        P, n_n, n_sp = 1, N, n_s1
        x_map1 = lambda p, n, s: (n, 0, s)

    x_tile1 = C * thw1 * it_x
    vmem1 = int(min(40 << 20, max(16 << 20, 2 * x_tile1 + (10 << 20))))
    p1_kernel = functools.partial(_partial_sums_kernel, nchunks=nchunks)

    psum, psq = pl.pallas_call(
        p1_kernel,
        grid=(P, n_n, n_sp),
        in_specs=[pl.BlockSpec((1, C, thw1), x_map1)],
        out_specs=[
            pl.BlockSpec((1, C, 128), lambda p, n, s: (p, 0, 0)),
            pl.BlockSpec((1, C, 128), lambda p, n, s: (p, 0, 0)),
        ],
        out_shape=(
            jax.ShapeDtypeStruct((P, C, 128), jnp.float32),   # partial sums
            jax.ShapeDtypeStruct((P, C, 128), jnp.float32),   # partial sum sq
        ),
        compiler_params=pltpu.CompilerParams(
            dimension_semantics=("parallel", "arbitrary", "arbitrary"),
            vmem_limit_bytes=vmem1),
    )(x3)

    # Tiny XLA epilogue: cross-lane/partition reduce, mean/var in f32 (cast to
    # x dtype like manual_bn), scale/shift, and the momentum buffer update.
    sum_c = jnp.sum(psum, axis=(0, 2))                  # (C,) f32
    sq_c = jnp.sum(psq, axis=(0, 2))                    # (C,) f32
    m_f32 = sum_c * inv_m
    var_f32 = sq_c * inv_m - m_f32 * m_f32
    m = m_f32.astype(x.dtype)
    var = var_f32.astype(x.dtype)
    g_c = gain.reshape(C)
    b_c = bias.reshape(C)
    scale_c = jax.lax.rsqrt(var + eps) * g_c
    shift_c = m * scale_c - b_c
    new_mean = stored_mean.astype(jnp.float32) * (1.0 - momentum) + m * momentum
    new_var = stored_var.astype(jnp.float32) * (1.0 - momentum) + var * momentum

    scale2 = scale_c.reshape(C, 1)
    shift2 = shift_c.reshape(C, 1)

    # Phase 2: streaming normalize (lane-dense spatial output).
    x_tile2 = C * thw2 * it_x
    out_tile2 = C * thw2 * it_out
    vmem2 = int(min(40 << 20,
                    max(16 << 20, 2 * (x_tile2 + out_tile2) + (10 << 20))))
    out3 = pl.pallas_call(
        _apply_kernel,
        grid=(N, n_s2),
        in_specs=[
            pl.BlockSpec((1, C, thw2), lambda n, s: (n, 0, s)),
            pl.BlockSpec((C, 1), lambda n, s: (0, 0)),
            pl.BlockSpec((C, 1), lambda n, s: (0, 0)),
        ],
        out_specs=pl.BlockSpec((1, C, thw2), lambda n, s: (n, 0, s)),
        out_shape=jax.ShapeDtypeStruct((N, C, HW), stat_dtype),
        compiler_params=pltpu.CompilerParams(
            dimension_semantics=("parallel", "parallel"),
            vmem_limit_bytes=vmem2),
    )(x3, scale2, shift2)

    out = out3.reshape(N, C, H, W)
    return out, new_mean, new_var


def _reference(x, gain, bias, eps=1e-5):
    """Pure-JAX reference mirroring manual_bn/fused_bn exactly."""
    xf = x.astype(jnp.float32)
    m = jnp.mean(xf, axis=(0, 2, 3), keepdims=True)
    m2 = jnp.mean(xf * xf, axis=(0, 2, 3), keepdims=True)
    var = (m2 - m * m).astype(x.dtype)
    m = m.astype(x.dtype)
    scale = jax.lax.rsqrt(var + eps) * gain
    shift = m * scale - bias
    return x * scale - shift, m.reshape(-1), var.reshape(-1)


if __name__ == "__main__":
    key = jax.random.PRNGKey(0)
    kx1, kx2, kx3, kg, kb = jax.random.split(key, 5)

    def check(x, gain, bias, stored_mean, stored_var, fwd):
        out, nm, nv = fwd(x, gain, bias, stored_mean, stored_var)
        out = jax.block_until_ready(out)
        nm = jax.block_until_ready(nm)
        nv = jax.block_until_ready(nv)
        ref_out, ref_m, ref_v = _reference(x, gain, bias)
        assert jnp.allclose(out, ref_out, atol=1e-5, rtol=1e-5), "out mismatch"
        assert jnp.allclose(nm, stored_mean * 0.9 + ref_m * 0.1, atol=1e-5)
        assert jnp.allclose(nv, stored_var * 0.9 + ref_v * 0.1, atol=1e-5)

    # Case 1: small layer -> fused single-kernel path (1R + 1W of x).
    N, C, H, W = 2, 4, 16, 16
    x = jax.random.normal(kx1, (N, C, H, W), dtype=jnp.float32)
    gain = 1.0 + 0.1 * jax.random.normal(kg, (1, C, 1, 1), dtype=jnp.float32)
    bias = 0.1 * jax.random.normal(kb, (1, C, 1, 1), dtype=jnp.float32)
    sm0 = jnp.zeros((C,), dtype=jnp.float32)
    sv0 = jnp.ones((C,), dtype=jnp.float32)
    check(x, gain, bias, sm0, sv0, jax.jit(my_bn_forward))

    # Case 2: streaming path, even N -> megacore split over batch, several
    # spatial tiles per image (exercises the revisited-accumulator pattern).
    N2, C2, H2, W2 = 2, 8, 32, 32
    x2 = jax.random.normal(kx2, (N2, C2, H2, W2), dtype=jnp.float32)
    gain2 = 1.0 + 0.1 * jax.random.normal(kg, (1, C2, 1, 1), dtype=jnp.float32)
    bias2 = 0.1 * jax.random.normal(kb, (1, C2, 1, 1), dtype=jnp.float32)
    sm2 = jnp.zeros((C2,), dtype=jnp.float32)
    sv2 = jnp.ones((C2,), dtype=jnp.float32)
    fwd_stream = jax.jit(functools.partial(
        my_bn_forward, force_streaming=True, spatial_tile_bytes=8192))
    check(x2, gain2, bias2, sm2, sv2, fwd_stream)

    # Case 3: streaming path, odd N -> megacore split over spatial tiles.
    x3_ = jax.random.normal(kx3, (3, C2, H2, W2), dtype=jnp.float32)
    check(x3_, gain2, bias2, sm2, sv2, fwd_stream)

    # TODO(synk): eval-mode branch (stored stats / accumulate_standing) is
    # plain fused_bn with constants and is left to the XLA wrapper.
    print("KERNEL_OK")
</pallas_src>

<mosaic_0001>
module attributes {stable_mosaic.version = 11 : i64} {
  func.func @_fused_bn_kernel(%arg0: i32, %arg1: memref<2x4x256xf32, #tpu.memory_space<vmem>>, %arg2: memref<4x1xf32, #tpu.memory_space<vmem>>, %arg3: memref<4x1xf32, #tpu.memory_space<vmem>>, %arg4: memref<4x1xf32, #tpu.memory_space<vmem>>, %arg5: memref<4x1xf32, #tpu.memory_space<vmem>>, %arg6: memref<2x4x256xf32, #tpu.memory_space<vmem>>, %arg7: memref<4x1xf32, #tpu.memory_space<vmem>>, %arg8: memref<4x1xf32, #tpu.memory_space<vmem>>) attributes {dimension_semantics = [#tpu.dimension_semantics<arbitrary>], iteration_bounds = array<i64: 1>, scalar_prefetch = 0 : i64, scratch_operands = 0 : i64, tpu.core_type = #tpu.core_type<tc>, window_params = [{pipeline_mode = #tpu.pipeline_mode<synchronous>, transform_indices = @transform_0, window_bounds = array<i64: 2, 4, 256>}, {pipeline_mode = #tpu.pipeline_mode<synchronous>, transform_indices = @transform_1, window_bounds = array<i64: 4, 1>}, {pipeline_mode = #tpu.pipeline_mode<synchronous>, transform_indices = @transform_2, window_bounds = array<i64: 4, 1>}, {pipeline_mode = #tpu.pipeline_mode<synchronous>, transform_indices = @transform_3, window_bounds = array<i64: 4, 1>}, {pipeline_mode = #tpu.pipeline_mode<synchronous>, transform_indices = @transform_4, window_bounds = array<i64: 4, 1>}, {pipeline_mode = #tpu.pipeline_mode<synchronous>, transform_indices = @transform_5, window_bounds = array<i64: 2, 4, 256>}, {pipeline_mode = #tpu.pipeline_mode<synchronous>, transform_indices = @transform_6, window_bounds = array<i64: 4, 1>}, {pipeline_mode = #tpu.pipeline_mode<synchronous>, transform_indices = @transform_7, window_bounds = array<i64: 4, 1>}]} {
    %c0 = arith.constant 0 : index
    %c0_0 = arith.constant 0 : index
    %c0_1 = arith.constant 0 : index
    %0 = vector.load %arg1[%c0, %c0_0, %c0_1] : memref<2x4x256xf32, #tpu.memory_space<vmem>>, vector<2x4x256xf32>
    %cst = arith.constant dense<0.000000e+00> : vector<2x4xf32>
    %1 = vector.multi_reduction <add>, %0, %cst [2] : vector<2x4x256xf32> to vector<2x4xf32>
    %2 = vector.shape_cast %1 : vector<2x4xf32> to vector<2x4x1xf32>
    %cst_2 = arith.constant dense<0.000000e+00> : vector<4x1xf32>
    %3 = vector.multi_reduction <add>, %2, %cst_2 [0] : vector<2x4x1xf32> to vector<4x1xf32>
    %4 = arith.mulf %0, %0 : vector<2x4x256xf32>
    %cst_3 = arith.constant dense<0.000000e+00> : vector<2x4xf32>
    %5 = vector.multi_reduction <add>, %4, %cst_3 [2] : vector<2x4x256xf32> to vector<2x4xf32>
    %6 = vector.shape_cast %5 : vector<2x4xf32> to vector<2x4x1xf32>
    %cst_4 = arith.constant dense<0.000000e+00> : vector<4x1xf32>
    %7 = vector.multi_reduction <add>, %6, %cst_4 [0] : vector<2x4x1xf32> to vector<4x1xf32>
    %cst_5 = arith.constant 0.001953125 : f32
    %8 = vector.broadcast %cst_5 : f32 to vector<4x1xf32>
    %9 = arith.mulf %3, %8 : vector<4x1xf32>
    %cst_6 = arith.constant 0.001953125 : f32
    %10 = vector.broadcast %cst_6 : f32 to vector<4x1xf32>
    %11 = arith.mulf %7, %10 : vector<4x1xf32>
    %12 = arith.mulf %9, %9 : vector<4x1xf32>
    %13 = arith.subf %11, %12 : vector<4x1xf32>
    %cst_7 = arith.constant 9.99999974E-6 : f32
    %14 = vector.broadcast %cst_7 : f32 to vector<4x1xf32>
    %15 = arith.addf %13, %14 : vector<4x1xf32>
    %16 = math.rsqrt %15 : vector<4x1xf32>
    %c0_8 = arith.constant 0 : index
    %c0_9 = arith.constant 0 : index
    %17 = vector.load %arg2[%c0_8, %c0_9] : memref<4x1xf32, #tpu.memory_space<vmem>>, vector<4x1xf32>
    %18 = arith.mulf %16, %17 : vector<4x1xf32>
    %19 = arith.mulf %9, %18 : vector<4x1xf32>
    %c0_10 = arith.constant 0 : index
    %c0_11 = arith.constant 0 : index
    %20 = vector.load %arg3[%c0_10, %c0_11] : memref<4x1xf32, #tpu.memory_space<vmem>>, vector<4x1xf32>
    %21 = arith.subf %19, %20 : vector<4x1xf32>
    %c0_12 = arith.constant 0 : index
    %c0_13 = arith.constant 0 : index
    %c0_14 = arith.constant 0 : index
    %22 = vector.load %arg1[%c0_12, %c0_13, %c0_14] : memref<2x4x256xf32, #tpu.memory_space<vmem>>, vector<2x4x256xf32>
    %23 = vector.shape_cast %18 : vector<4x1xf32> to vector<1x4x1xf32>
    %24 = vector.broadcast %23 : vector<1x4x1xf32> to vector<2x4x256xf32>
    %25 = arith.mulf %22, %24 : vector<2x4x256xf32>
    %26 = vector.shape_cast %21 : vector<4x1xf32> to vector<1x4x1xf32>
    %27 = vector.broadcast %26 : vector<1x4x1xf32> to vector<2x4x256xf32>
    %28 = arith.subf %25, %27 : vector<2x4x256xf32>
    %c0_15 = arith.constant 0 : index
    %c0_16 = arith.constant 0 : index
    %c0_17 = arith.constant 0 : index
    %29 = vector.load %arg6[%c0_15, %c0_16, %c0_17] : memref<2x4x256xf32, #tpu.memory_space<vmem>>, vector<2x4x256xf32>
    tpu.vector_store %arg6[%c0_15, %c0_16, %c0_17], %28 {strides = array<i32>} : memref<2x4x256xf32, #tpu.memory_space<vmem>>, vector<2x4x256xf32>,
    %c0_18 = arith.constant 0 : index
    %c0_19 = arith.constant 0 : index
    %30 = vector.load %arg4[%c0_18, %c0_19] : memref<4x1xf32, #tpu.memory_space<vmem>>, vector<4x1xf32>
    %cst_20 = arith.constant 0.899999976 : f32
    %31 = vector.broadcast %cst_20 : f32 to vector<4x1xf32>
    %32 = arith.mulf %30, %31 : vector<4x1xf32>
    %cst_21 = arith.constant 1.000000e-01 : f32
    %33 = vector.broadcast %cst_21 : f32 to vector<4x1xf32>
    %34 = arith.mulf %9, %33 : vector<4x1xf32>
    %35 = arith.addf %32, %34 : vector<4x1xf32>
    %c0_22 = arith.constant 0 : index
    %c0_23 = arith.constant 0 : index
    %36 = vector.load %arg7[%c0_22, %c0_23] : memref<4x1xf32, #tpu.memory_space<vmem>>, vector<4x1xf32>
    tpu.vector_store %arg7[%c0_22, %c0_23], %35 {strides = array<i32>} : memref<4x1xf32, #tpu.memory_space<vmem>>, vector<4x1xf32>,
    %c0_24 = arith.constant 0 : index
    %c0_25 = arith.constant 0 : index
    %37 = vector.load %arg5[%c0_24, %c0_25] : memref<4x1xf32, #tpu.memory_space<vmem>>, vector<4x1xf32>
    %cst_26 = arith.constant 0.899999976 : f32
    %38 = vector.broadcast %cst_26 : f32 to vector<4x1xf32>
    %39 = arith.mulf %37, %38 : vector<4x1xf32>
    %cst_27 = arith.constant 1.000000e-01 : f32
    %40 = vector.broadcast %cst_27 : f32 to vector<4x1xf32>
    %41 = arith.mulf %13, %40 : vector<4x1xf32>
    %42 = arith.addf %39, %41 : vector<4x1xf32>
    %c0_28 = arith.constant 0 : index
    %c0_29 = arith.constant 0 : index
    %43 = vector.load %arg8[%c0_28, %c0_29] : memref<4x1xf32, #tpu.memory_space<vmem>>, vector<4x1xf32>
    tpu.vector_store %arg8[%c0_28, %c0_29], %42 {strides = array<i32>} : memref<4x1xf32, #tpu.memory_space<vmem>>, vector<4x1xf32>,
    return
  }
  func.func @transform_0(%arg0: i32) -> (i32, i32, i32) {
    %c0_i32 = arith.constant 0 : i32
    %c0_i32_0 = arith.constant 0 : i32
    %c0_i32_1 = arith.constant 0 : i32
    %c0_i32_2 = arith.constant 0 : i32
    return %c0_i32, %c0_i32_0, %c0_i32_1 : i32, i32, i32
  }
  func.func @transform_1(%arg0: i32) -> (i32, i32) {
    %c0_i32 = arith.constant 0 : i32
    %c0_i32_0 = arith.constant 0 : i32
    %c0_i32_1 = arith.constant 0 : i32
    return %c0_i32, %c0_i32_0 : i32, i32
  }
  func.func @transform_2(%arg0: i32) -> (i32, i32) {
    %c0_i32 = arith.constant 0 : i32
    %c0_i32_0 = arith.constant 0 : i32
    %c0_i32_1 = arith.constant 0 : i32
    return %c0_i32, %c0_i32_0 : i32, i32
  }
  func.func @transform_3(%arg0: i32) -> (i32, i32) {
    %c0_i32 = arith.constant 0 : i32
    %c0_i32_0 = arith.constant 0 : i32
    %c0_i32_1 = arith.constant 0 : i32
    return %c0_i32, %c0_i32_0 : i32, i32
  }
  func.func @transform_4(%arg0: i32) -> (i32, i32) {
    %c0_i32 = arith.constant 0 : i32
    %c0_i32_0 = arith.constant 0 : i32
    %c0_i32_1 = arith.constant 0 : i32
    return %c0_i32, %c0_i32_0 : i32, i32
  }
  func.func @transform_5(%arg0: i32) -> (i32, i32, i32) {
    %c0_i32 = arith.constant 0 : i32
    %c0_i32_0 = arith.constant 0 : i32
    %c0_i32_1 = arith.constant 0 : i32
    %c0_i32_2 = arith.constant 0 : i32
    return %c0_i32, %c0_i32_0, %c0_i32_1 : i32, i32, i32
  }
  func.func @transform_6(%arg0: i32) -> (i32, i32) {
    %c0_i32 = arith.constant 0 : i32
    %c0_i32_0 = arith.constant 0 : i32
    %c0_i32_1 = arith.constant 0 : i32
    return %c0_i32, %c0_i32_0 : i32, i32
  }
  func.func @transform_7(%arg0: i32) -> (i32, i32) {
    %c0_i32 = arith.constant 0 : i32
    %c0_i32_0 = arith.constant 0 : i32
    %c0_i32_1 = arith.constant 0 : i32
    return %c0_i32, %c0_i32_0 : i32, i32
  }
}

</mosaic_0001>

<bundles_post_ra>
// kernel: my_bn_forward.1
= control target key start
LH: loop header
LB: loop body
LE: loop exit
PB: predicated region body
PF: predicated region fallthrough
CT: control target
= control target key end

     0   :  { %vm31_vm0 = vcmask 1043456   ;;  %v138_v20 = vmov 0   ;;  %vm111_vm1 = vcmask 3072   ;;  %v139_v50 = vmov 839922192   ;;  %s238_s0 = inlined_call_operand.vmem [shape: f32[2,4,256], index: 0, kind: input, shape index: {}]   ;;  %s239_s3 = inlined_call_operand.vmem [shape: f32[4,1], index: 3, kind: input, shape index: {}]   ;;  %s240_s4 = inlined_call_operand.vmem [shape: f32[4,1], index: 4, kind: input, shape index: {}]   ;;  %s241_s6 = inlined_call_operand.vmem [shape: f32[4,1], index: 6, kind: output, shape index: {1}]   ;;  %s242_s7 = inlined_call_operand.vmem [shape: f32[4,1], index: 7, kind: output, shape index: {2}]   ;;  %s243_s1 = inlined_call_operand.vmem [shape: f32[4,1], index: 1, kind: input, shape index: {}]   ;;  %s244_s2 = inlined_call_operand.vmem [shape: f32[4,1], index: 2, kind: input, shape index: {}]   ;;  %s245_s5 = inlined_call_operand.vmem [shape: f32[2,4,256], index: 5, kind: output, shape index: {0}]  }
   0x1   :  { %v183_v0 = vld [vmem:[%s238_s0] sm:$0xff]  ;;  %v188_v1 = vld [vmem:[%s238_s0 + $0x8] sm:$0xff]  ;;  %132 = vset.pattern.permute.xlu0 %v138_v20  ;;  %133 = vset.pattern.permute.xlu1 %v138_v20  ;;  %v82_v51 = vunpack.c.l.s4 %v139_v50  ;;  %v84_v52 = vlaneseq }
   0x2   :  { %v27_v2 = vcombine.high %v183_v0, %v183_v0  ;;  %v32_v3 = vsel %vm31_vm0, %v183_v0, 0.0  ;;  %v45_v4 = vmul.f32 %v183_v0, %v183_v0  ;;  %v28_v5 = vcombine.high %v188_v1, %v188_v1  ;;  %v107_v25 = vld [vmem:[%s239_s3] sm:$0xf] }
   0x3   :  { %v37_v6 = vsel %vm31_vm0, %v188_v1, 0.0  ;;  %v46_v7 = vmul.f32 %v188_v1, %v188_v1  ;;  %v108_v31 = vmul.f32 0.9, %v107_v25  ;;  %v113_v34 = vld [vmem:[%s240_s4] sm:$0xf]  ;;  %v83_v53 = vunpack.c.0.s8 %v82_v51 }
   0x4   :  { %v33_v8 = vsel %vm31_vm0, %v27_v2, 0.0  ;;  %v49_v9 = vcombine.high %v45_v4, %v45_v4  ;;  %v53_v10 = vsel %vm31_vm0, %v45_v4, 0.0  ;;  %v38_v11 = vsel %vm31_vm0, %v28_v5, 0.0  ;;  %v72_v44 = vld [vmem:[%s243_s1] sm:$0xf] }
   0x5   :  { %v34_v12 = vadd.f32 %v33_v8, %v32_v3  ;;  %v50_v13 = vcombine.high %v46_v7, %v46_v7  ;;  %v58_v15 = vsel %vm31_vm0, %v46_v7, 0.0  ;;  %v39_v17 = vadd.f32 %v38_v11, %v37_v6  ;;  %v75_v47 = vld [vmem:[%s244_s2] sm:$0xf] }
   0x6   :  { %v54_v14 = vsel %vm31_vm0, %v49_v9, 0.0  ;;  %v114_v39 = vmul.f32 0.9, %v113_v34  ;;  %v85_v54 = vshrl.u32 %v84_v52, 7 }
   0x7   :  { %35 = vadd.xlane.f32.xlu0 %v34_v12  ;;  %v55_v16 = vadd.f32 %v54_v14, %v53_v10  ;;  %v59_v18 = vsel %vm31_vm0, %v50_v13, 0.0 }
   0x8   :  { %v60_v19 = vadd.f32 %v59_v18, %v58_v15  ;;  %v86_v55 = vsub.s32 %v83_v53, %v85_v54 }
   0x9   :  { %56 = vadd.xlane.f32.xlu1 %v55_v16 }
   0xb   :  { %40 = vadd.xlane.f32.xlu0 %v39_v17 }
   0xd   :  { %61 = vadd.xlane.f32.xlu1 %v60_v19 }
  0x94   :  { %v36_v21 = vpop.xlane.xlu0 %35 }
  0x95   :  { %v42_v24 = vsel %vm31_vm0, %v36_v21, 0.0 }
  0x96   :  { %v57_v22 = vpop.xlane.xlu1 %56 }
  0x97   :  { %v63_v29 = vsel %vm31_vm0, %v57_v22, 0.0 }
  0x98   :  { %v41_v23 = vpop.xlane.xlu0 %40 }
  0x99   :  { %v43_v26 = vsel %vm31_vm0, %v41_v23, 0.0 }
  0x9a   :  { %v44_v27 = vadd.f32 %v43_v26, %v42_v24  ;;  %v62_v28 = vpop.xlane.xlu1 %61 }
  0x9b   :  { %v64_v30 = vsel %vm31_vm0, %v62_v28, 0.0 }
  0x9c   :  { %v66_v32 = vmul.f32 0.001953125, %v44_v27  ;;  %v65_v33 = vadd.f32 %v64_v30, %v63_v29 }
  0x9e   :  { %v109_v35 = vmul.f32 0.1, %v66_v32  ;;  %v67_v36 = vmul.f32 0.001953125, %v65_v33  ;;  %v68_v37 = vmul.f32 %v66_v32, %v66_v32 }
  0xa0   :  { %v110_v38 = vadd.f32 %v109_v35, %v108_v31  ;;  %v69_v40 = vsub.f32 %v67_v36, %v68_v37 }
  0xa2   :  { %112 = vst.msk [vmem:[%s241_s6] sm:$0xf] %vm111_vm1, %v110_v38  ;;  %v70_v41 = vadd.f32 1e-05, %v69_v40  ;;  %v115_v42 = vmul.f32 0.1, %v69_v40 }
  0xa4   :  { %136 = vrsqrt.f32 %v70_v41  ;;  %v116_v43 = vadd.f32 %v115_v42, %v114_v39 }
  0xa6   :  { %117 = vst.msk [vmem:[%s242_s7] sm:$0xf] %vm111_vm1, %v116_v43 }
  0xae   :  { %v137_v45 = vpop.eup %136 }
  0xaf   :  { %v73_v46 = vmul.f32 %v137_v45, %v72_v44 }
  0xb1   :  { %79 = vperm.xlu0 %132, %v73_v46   ;;  %v74_v48 = vmul.f32 %v73_v46, %v66_v32 }
  0xb3   :  { %v76_v49 = vsub.f32 %v74_v48, %v75_v47 }
  0xb5   :  { %93 = vperm.xlu1 %133, %v76_v49  }
 0x130   :  { %v80_v56 = vpop.permute.xlu0 %79 }
 0x131   :  { %v87_v57 = vrot.slane %v80_v56, %v86_v55 }
 0x133   :  { %v89_v59 = vmul.f32 %v87_v57, %v183_v0  ;;  %v90_v60 = vmul.f32 %v87_v57, %v188_v1 }
 0x134   :  { %v94_v58 = vpop.permute.xlu1 %93 }
 0x135   :  { %v101_v61 = vrot.slane %v94_v58, %v86_v55 }
 0x137   :  { %v103_v62 = vsub.f32 %v89_v59, %v101_v61  ;;  %v104_v63 = vsub.f32 %v90_v60, %v101_v61 }
 0x139   :  { %105 = vst [vmem:[%s245_s5] sm:$0xff] %v103_v62  ;;  %106 = vst [vmem:[%s245_s5 + $0x8] sm:$0xff] %v104_v63 }

</bundles_post_ra>
